<compile_context>
chip_gen: v6e
topology: v6e:2x2x1
jax: 0.10.0
libtpu: 0.0.40
codegen_flags: <defaults>
</compile_context>

<pallas_src>
import functools

import jax
import jax.numpy as jnp
from jax.experimental import pallas as pl
from jax.experimental.pallas import tpu as pltpu


_LANE = 128
_KSTEPS = 3           # layer-1 K streamed in 3 chunks (3 taps = 3*C0 rows each)
_BN_EPS = 1e-5


def _round_up(x, k):
    return -(-x // k) * k


# ----------------------------------------------------------------------------
# pltpu.roll direction probe (cached; one tiny eager compile per process).
# Keeps the kernel correct regardless of whether pltpu.roll matches jnp.roll's
# sign convention on this jax version.
# ----------------------------------------------------------------------------
_ROLL_SIGN_CACHE = []


def _pltpu_roll_sign():
    if not _ROLL_SIGN_CACHE:
        def probe(x_ref, o_ref):
            o_ref[...] = pltpu.roll(x_ref[...], 1, axis=0)

        x = jnp.arange(8 * 128, dtype=jnp.float32).reshape(8, 128)
        y = pl.pallas_call(
            probe, out_shape=jax.ShapeDtypeStruct((8, 128), jnp.float32))(x)
        _ROLL_SIGN_CACHE.append(
            1 if bool(jnp.array_equal(y, jnp.roll(x, 1, axis=0))) else -1)
    return _ROLL_SIGN_CACHE[0]


# ----------------------------------------------------------------------------
# Fused kernel: 4 x (conv3x3 + folded-BN affine + activation)
# ----------------------------------------------------------------------------
def _fused_head_kernel(x_ref,
                       w1_ref, s1_ref, b1_ref,
                       w2_hbm, s2_ref, b2_ref,
                       w3_hbm, s3_ref, b3_ref,
                       w4_hbm, s4_ref, b4_ref,
                       o_ref,
                       xpad_ref, slab1_ref, acc_ref,
                       w2_buf, w3_buf, w4_buf, sems,
                       *, n, h, w, hp, wp, roll_sign):
    k = pl.program_id(0)
    last = pl.num_programs(0) - 1
    c0 = x_ref.shape[-1]
    m = n * hp * wp

    # Static flat-row shifts for the nine 3x3 taps (jnp.roll convention,
    # corrected by roll_sign).  Tap t = 3*dy + dx needs x[p + (dy-1)*wp + (dx-1)],
    # i.e. a roll of the flat row axis by +((1-dy)*wp + (1-dx)).
    shifts = [(roll_sign * ((1 - dy) * wp + (1 - dx))) % m
              for dy in range(3) for dx in range(3)]

    # ---------------- step 0: setup + kick off background weight DMAs --------
    @pl.when(k == 0)
    def _init():
        # Layer-2..4 weights stream from HBM while the layer-1 grid steps run.
        pltpu.make_async_copy(w2_hbm, w2_buf, sems.at[0]).start()
        pltpu.make_async_copy(w3_hbm, w3_buf, sems.at[1]).start()
        pltpu.make_async_copy(w4_hbm, w4_buf, sems.at[2]).start()

        # In-kernel padding=1: zero only the halo (rows 0 / hp-1, cols w..wp-1);
        # the interior is overwritten by the tile-aligned input store below.
        xpad_ref[:, 0:1, :, :] = jnp.zeros((n, 1, wp, c0), jnp.float32)
        xpad_ref[:, hp - 1:hp, :, :] = jnp.zeros((n, 1, wp, c0), jnp.float32)
        xpad_ref[:, 1:1 + h, w:wp, :] = jnp.zeros((n, h, wp - w, c0), jnp.float32)
        xpad_ref[:, 1:1 + h, 0:w, :] = x_ref[...].astype(jnp.float32)

        # Layer-1 im2col slab (bf16): chunk c holds taps 3c..3c+2.  Each grid
        # step consumes one chunk so the next w1 K-chunk DMA overlaps with the
        # current chunk's matmul.
        xflat = xpad_ref[...].reshape(m, c0)          # free reshape: wp % 8 == 0
        for t, s in enumerate(shifts):
            col = pltpu.roll(xflat, s, axis=0) if s else xflat
            slab1_ref[t // 3, :, (t % 3) * c0:(t % 3 + 1) * c0] = (
                col.astype(jnp.bfloat16))

        acc_ref[...] = jnp.zeros_like(acc_ref)

    # ---------------- every step: one K-chunk of the layer-1 matmul ----------
    acc_ref[...] += jnp.dot(slab1_ref[k], w1_ref[...],
                            preferred_element_type=jnp.float32)

    # ---------------- last step: BN/ReLU for layer 1, then layers 2..4 -------
    @pl.when(k == last)
    def _tail():
        pltpu.make_async_copy(w2_hbm, w2_buf, sems.at[0]).wait()
        pltpu.make_async_copy(w3_hbm, w3_buf, sems.at[1]).wait()
        pltpu.make_async_copy(w4_hbm, w4_buf, sems.at[2]).wait()

        # Interior mask, built once: re-zeroes the halo after layers 1-3 so the
        # next conv still sees exact zero padding (flat-roll wraparound only
        # ever lands on these zeroed rows/cols -- see wrapper asserts).
        yy = jax.lax.broadcasted_iota(jnp.int32, (n, hp, wp, 1), 1)
        xx = jax.lax.broadcasted_iota(jnp.int32, (n, hp, wp, 1), 2)
        interior = (yy >= 1) & (yy <= h) & (xx < w)
        mask = jnp.where(interior, 1.0, 0.0).reshape(m, 1)

        def conv3x3_bn_act(a, w_buf_, s_ref_, b_ref_, act, mask_out):
            # a: (m, cin) f32 with a zero halo.  im2col along K, single matmul.
            cols = []
            for s in shifts:
                col = pltpu.roll(a, s, axis=0) if s else a
                cols.append(col.astype(jnp.bfloat16))
            slab = jnp.concatenate(cols, axis=1)          # (m, 9*cin) bf16
            y = jnp.dot(slab, w_buf_[...], preferred_element_type=jnp.float32)
            y = y * s_ref_[...] + b_ref_[...]             # folded BN + conv bias
            y = jnp.tanh(y) if act == "tanh" else jnp.maximum(y, 0.0)
            return y * mask if mask_out else y

        y1 = jnp.maximum(acc_ref[...] * s1_ref[...] + b1_ref[...], 0.0) * mask
        y2 = conv3x3_bn_act(y1, w2_buf, s2_ref, b2_ref, "relu", True)
        y3 = conv3x3_bn_act(y2, w3_buf, s3_ref, b3_ref, "relu", True)
        y4 = conv3x3_bn_act(y3, w4_buf, s4_ref, b4_ref, "tanh", False)
        o_ref[...] = y4                                   # lane-dense (m, 128)


# ----------------------------------------------------------------------------
# Parameter prep: bf16 weights as (9*Cin_pad, Cout_pad), channels lane-padded
# ----------------------------------------------------------------------------
def _prep_padded_params(params, c0):
    prepped = []
    cin_pad = c0
    for name in ("conv1", "conv2", "conv3", "conv4"):
        p = params[name]
        _, cin, cout = p["w9"].shape
        assert cin <= cin_pad
        cout_pad = _round_up(cout, _LANE)
        wpad = jnp.pad(p["w9"].astype(jnp.bfloat16),
                       ((0, 0), (0, cin_pad - cin), (0, cout_pad - cout)))
        wflat = wpad.reshape(9 * cin_pad, cout_pad)
        s = jnp.pad(p["scale"], (0, cout_pad - cout),
                    constant_values=1.0).reshape(1, cout_pad)
        b = jnp.pad(p["bias"], (0, cout_pad - cout)).reshape(1, cout_pad)
        prepped.append((wflat, s, b))
        cin_pad = cout_pad
    return prepped


# ----------------------------------------------------------------------------
# Forward pass (NCHW in/out, matching the PyTorch module)
# ----------------------------------------------------------------------------
@functools.partial(jax.jit, static_argnums=(2,))
def _forward_impl(params, x_nchw, roll_sign):
    n, c0, h, w = x_nchw.shape
    hp = h + 2                       # one zero row above / below each image
    wp = _round_up(w + 1, 8)         # >=1 zero col on the right, tile aligned
    m = n * hp * wp

    # Invariants the in-kernel flat-roll padding trick relies on: every
    # wrapped-around read must land on a zeroed halo row / column.
    assert hp == h + 2 and wp >= w + 1 and wp % 8 == 0
    assert c0 % _LANE == 0, "conv1 expects 512 input channels"

    (w1, s1, b1), (w2, s2, b2), (w3, s3, b3), (w4, s4, b4) = \
        _prep_padded_params(params, c0)
    assert w1.shape[0] % _KSTEPS == 0
    ktile = w1.shape[0] // _KSTEPS              # = 3 * c0
    cout1 = w1.shape[1]
    cout_final = w4.shape[-1]

    # NCHW -> NHWC (channels on lanes) fused with the bf16 cast: one tiny XLA
    # op in front of the single fused Pallas kernel.
    x_nhwc = jnp.transpose(x_nchw, (0, 2, 3, 1)).astype(jnp.bfloat16)

    kernel = functools.partial(_fused_head_kernel, n=n, h=h, w=w, hp=hp, wp=wp,
                               roll_sign=roll_sign)

    def fixed(shape):
        return pl.BlockSpec(shape, lambda kk: (0,) * len(shape))

    out_slab = pl.pallas_call(
        kernel,
        out_shape=jax.ShapeDtypeStruct((m, cout_final), jnp.float32),
        grid=(_KSTEPS,),
        in_specs=[
            fixed((n, h, w, c0)),                                   # x (bf16)
            pl.BlockSpec((ktile, cout1), lambda kk: (kk, 0)),       # w1 K-chunks
            fixed(s1.shape), fixed(b1.shape),
            pl.BlockSpec(memory_space=pl.ANY),                      # w2 (HBM)
            fixed(s2.shape), fixed(b2.shape),
            pl.BlockSpec(memory_space=pl.ANY),                      # w3 (HBM)
            fixed(s3.shape), fixed(b3.shape),
            pl.BlockSpec(memory_space=pl.ANY),                      # w4 (HBM)
            fixed(s4.shape), fixed(b4.shape),
        ],
        out_specs=fixed((m, cout_final)),
        scratch_shapes=[
            pltpu.VMEM((n, hp, wp, c0), jnp.float32),       # zero-padded input
            pltpu.VMEM((_KSTEPS, m, ktile), jnp.bfloat16),  # layer-1 im2col slab
            pltpu.VMEM((m, cout1), jnp.float32),            # layer-1 accumulator
            pltpu.VMEM(w2.shape, jnp.bfloat16),             # streamed w2
            pltpu.VMEM(w3.shape, jnp.bfloat16),             # streamed w3
            pltpu.VMEM(w4.shape, jnp.bfloat16),             # streamed w4
            pltpu.SemaphoreType.DMA((3,)),
        ],
        compiler_params=pltpu.CompilerParams(
            dimension_semantics=("arbitrary",),
            vmem_limit_bytes=32 * 1024 * 1024,
        ),
    )(x_nhwc, w1, s1, b1, w2, s2, b2, w3, s3, b3, w4, s4, b4)

    out = out_slab.reshape(n, hp, wp, cout_final)[:, 1:1 + h, :w, :3]
    return jnp.transpose(out, (0, 3, 1, 2))                 # back to NCHW


def fine_tuned_inpainting_forward(params, x_nchw):
    # TODO(synk): `inpainting_network` is an injected external submodule with
    # unspecified architecture; modeled as identity (its output must be 512-ch).
    return _forward_impl(params, x_nchw, _pltpu_roll_sign())


# ----------------------------------------------------------------------------
# Parameter construction (deterministic, synthetic)
# ----------------------------------------------------------------------------
def _make_layer_params(key, cin, cout, with_bn):
    kw, kb, kg, kbe, km, kv = jax.random.split(key, 6)
    # PyTorch conv layout (Cout, Cin, 3, 3) -> (3, 3, Cin, Cout) -> (9, Cin, Cout)
    wt = 0.05 * jax.random.normal(kw, (cout, cin, 3, 3), jnp.float32)
    w9 = jnp.transpose(wt, (2, 3, 1, 0)).reshape(9, cin, cout)
    b_conv = 0.05 * jax.random.normal(kb, (cout,), jnp.float32)
    if with_bn:
        gamma = 1.0 + 0.1 * jax.random.normal(kg, (cout,), jnp.float32)
        beta = 0.1 * jax.random.normal(kbe, (cout,), jnp.float32)
        mean = 0.1 * jax.random.normal(km, (cout,), jnp.float32)
        var = 0.5 + jnp.abs(jax.random.normal(kv, (cout,), jnp.float32))
        # Inference BN folded into affine: y = (conv + b - mean)*g/sqrt(var+eps) + beta
        scale = gamma / jnp.sqrt(var + _BN_EPS)
        bias = (b_conv - mean) * scale + beta
    else:
        scale = jnp.ones((cout,), jnp.float32)
        bias = b_conv
    return {"w9": w9, "scale": scale, "bias": bias}


def make_params(key):
    k1, k2, k3, k4 = jax.random.split(key, 4)
    return {
        "conv1": _make_layer_params(k1, 512, 256, with_bn=True),
        "conv2": _make_layer_params(k2, 256, 128, with_bn=True),
        "conv3": _make_layer_params(k3, 128, 64, with_bn=True),
        "conv4": _make_layer_params(k4, 64, 3, with_bn=False),
    }


# ----------------------------------------------------------------------------
# Pure-JAX reference (same bf16-weight / f32-accumulate precision)
# ----------------------------------------------------------------------------
def _ref_layer(x_nhwc, p, activation):
    cin, cout = p["w9"].shape[1], p["w9"].shape[2]
    w_hwio = p["w9"].astype(jnp.bfloat16).reshape(3, 3, cin, cout)
    y = jax.lax.conv_general_dilated(
        x_nhwc.astype(jnp.bfloat16), w_hwio, window_strides=(1, 1),
        padding="SAME", dimension_numbers=("NHWC", "HWIO", "NHWC"),
        preferred_element_type=jnp.float32)
    y = y * p["scale"] + p["bias"]
    if activation == "relu":
        y = jnp.maximum(y, 0.0)
    else:
        y = jnp.tanh(y)
    return y


def reference_forward(params, x_nchw):
    x = jnp.transpose(x_nchw, (0, 2, 3, 1))
    x = _ref_layer(x, params["conv1"], "relu")
    x = _ref_layer(x, params["conv2"], "relu")
    x = _ref_layer(x, params["conv3"], "relu")
    x = _ref_layer(x, params["conv4"], "tanh")
    return jnp.transpose(x, (0, 3, 1, 2))


if __name__ == "__main__":
    key = jax.random.PRNGKey(0)
    kx, kp = jax.random.split(key)

    # conv1 requires 512 input channels; small spatial size 8x8, batch 2.
    x = jax.random.normal(kx, (2, 512, 8, 8), jnp.float32)
    params = make_params(kp)

    out = fine_tuned_inpainting_forward(params, x)
    out = jax.block_until_ready(out)
    assert out.shape == (2, 3, 8, 8), out.shape

    ref = jax.block_until_ready(jax.jit(reference_forward)(params, x))
    max_err = float(jnp.max(jnp.abs(out - ref)))
    assert jnp.allclose(out, ref, rtol=1e-2, atol=1e-2), max_err

    print("KERNEL_OK")
</pallas_src>

<mosaic_0001>
module attributes {stable_mosaic.version = 11 : i64} {
  func.func @probe(%arg0: memref<8x128xf32, #tpu.memory_space<vmem>>, %arg1: memref<8x128xf32, #tpu.memory_space<vmem>>) attributes {dimension_semantics = [], scalar_prefetch = 0 : i64, scratch_operands = 0 : i64, tpu.core_type = #tpu.core_type<tc>} {
    %c0 = arith.constant 0 : index
    %c0_0 = arith.constant 0 : index
    %0 = vector.load %arg0[%c0, %c0_0] : memref<8x128xf32, #tpu.memory_space<vmem>>, vector<8x128xf32>
    %c1_i32 = arith.constant 1 : i32
    %1 = tpu.dynamic_rotate %0 by %c1_i32 dim 0 : vector<8x128xf32>, i32 -> vector<8x128xf32>
    %c0_1 = arith.constant 0 : index
    %c0_2 = arith.constant 0 : index
    %2 = vector.load %arg1[%c0_1, %c0_2] : memref<8x128xf32, #tpu.memory_space<vmem>>, vector<8x128xf32>
    tpu.vector_store %arg1[%c0_1, %c0_2], %1 {strides = array<i32>} : memref<8x128xf32, #tpu.memory_space<vmem>>, vector<8x128xf32>,
    return
  }
}

</mosaic_0001>

<bundles_post_ra>
// kernel: tpu_custom_call.1
= control target key start
LH: loop header
LB: loop body
LE: loop exit
PB: predicated region body
PF: predicated region fallthrough
CT: control target
= control target key end

     0   :  { %6 = vsyncpa [#allocation3], 0  ;;  %s103_s0 = inlined_call_operand.hbm [shape: f32[8,128], index: 0, kind: input, shape index: {}]   ;;  %s104_s1 = inlined_call_operand.hbm [shape: f32[8,128], index: 1, kind: output, shape index: {}]  }
   0x1   :  { %7 = vsyncpa [#allocation4], 0  ;;  %s85_s6 = smov [#allocation2]  }
   0x2   :  { %s14_s7 = sshll.u32 %s85_s6, 4  ;;  %s15_s7 = int_to_ptr.vmem [resolvable:$true] %s14_s7 }
   0x3   :  { %s49_s8 = scalar_lea.vmem %s15_s7, 128  ;;  %p54_p1 = scmp.lt.s32.totalorder %s15_s7, %s15_s7 }
   0x4   :  { %p50_p0 = scmp.ne.s32.totalorder %s15_s7, %s49_s8  ;;  %p55_p2 = scmp.lt.s32.totalorder %s49_s8, %s49_s8 }
   0x6   :  { %p56_p3 = por %p55_p2, %p54_p1 }
   0x8   :  { %p57_p4 = pnand %p56_p3, %p50_p0 }
   0xa   :  { %60 = shalt.err (!%p57_p4)
}
   0xb   :  { %17 = dma.hbm_to_vmem [thread:$0]  %s103_s0, 128, %s15_s7, [#allocation3]  }
   0xc   :  { %81 = dma.done.wait [#allocation3], 128  }
   0xd   :  { %82 = vsyncadd [#allocation3], 4294967168  ;;  %s86_s11 = smov [#allocation5]   ;;  %v21_v0 = vld [vmem:[#allocation2] sm:$0xff] }
   0xe   :  { %s30_s12 = sshll.u32 %s86_s11, 4  ;;  %v22_v1 = vrot.slane %v21_v0, 7  ;;  %s31_s12 = int_to_ptr.vmem [resolvable:$true] %s30_s12 }
   0xf   :  { %s61_s13 = scalar_lea.vmem %s31_s12, 128  ;;  %p66_p6 = scmp.lt.s32.totalorder %s31_s12, %s31_s12 }
  0x10   :  { %23 = vst [vmem:[#allocation5] sm:$0xff] %v22_v1  ;;  %p62_p5 = scmp.ne.s32.totalorder %s31_s12, %s61_s13  ;;  %p67_p7 = scmp.lt.s32.totalorder %s61_s13, %s61_s13 }
  0x12   :  { %p68_p8 = por %p67_p7, %p66_p6 }
  0x14   :  { %p69_p9 = pnand %p68_p8, %p62_p5 }
  0x16   :  { %72 = shalt.err (!%p69_p9)
}
  0x17   :  { %33 = dma.vmem_to_hbm [thread:$0]  %s31_s12, 128, %s104_s1, [#allocation4]  }
  0x18   :  { %83 = dma.done.wait [#allocation4], 128  }
  0x19   :  { %84 = vsyncadd [#allocation4], 4294967168 }
  0x1a   :  { %37 = vsyncpa [#allocation3], 1 }
  0x1b   :  { %38 = vsyncpa [#allocation4], 1 }

</bundles_post_ra>
